<compile_context>
chip_gen: v7x
topology: tpu7x:2x2x1
jax: 0.10.0
libtpu: 0.0.40
codegen_flags: <defaults>
</compile_context>

<pallas_src>
import functools

import jax
import jax.numpy as jnp
from jax.experimental import pallas as pl
from jax.experimental.pallas import tpu as pltpu

_LANES = 128            # lane width
_ACC_ROWS = 8           # sublane rows of the vector accumulator
_MAX_BLOCK_ROWS = 2048  # 2048*128*4B = 1 MiB per f32 input tile


def _round_up(x, m):
    return ((x + m - 1) // m) * m


# ---------------- Pallas kernels ----------------

def _tail_valid(block_rows, total_rows):
    """Row-validity mask for the (possibly ragged) current block."""
    row0 = pl.program_id(0) * block_rows
    rid = jax.lax.broadcasted_iota(jnp.int32, (block_rows, _LANES), 0) + row0
    return rid < total_rows


def _max_kernel(p_ref, t_ref, max_ref, *, block_rows, total_rows, mask_tail):
    """Running elementwise max of |t - p| into an (8,128) accumulator."""
    @pl.when(pl.program_id(0) == 0)
    def _():
        max_ref[...] = jnp.zeros_like(max_ref)   # |diff| >= 0, so 0 is a safe init
    a = jnp.abs(t_ref[...].astype(jnp.float32) - p_ref[...].astype(jnp.float32))
    if mask_tail:   # static: only when the last block is ragged
        a = jnp.where(_tail_valid(block_rows, total_rows), a, 0.0)
    a = a.reshape(-1, _ACC_ROWS, _LANES)          # layout-trivial sublane split
    max_ref[...] = jnp.maximum(max_ref[...], jnp.max(a, axis=0))


def _max_count_kernel(m_ref, p_ref, t_ref, max_ref, cnt_ref, *,
                      block_rows, total_rows, mask_tail):
    """Masked variant: also accumulates the selected-element count."""
    @pl.when(pl.program_id(0) == 0)
    def _():
        max_ref[...] = jnp.zeros_like(max_ref)
        cnt_ref[...] = jnp.zeros_like(cnt_ref)
    sel = m_ref[...] != 0                         # int8 mask -> bool in-register
    if mask_tail:
        sel = jnp.logical_and(sel, _tail_valid(block_rows, total_rows))
    a = jnp.abs(t_ref[...].astype(jnp.float32) - p_ref[...].astype(jnp.float32))
    a = jnp.where(sel, a, 0.0).reshape(-1, _ACC_ROWS, _LANES)
    ones = jnp.where(sel, 1.0, 0.0).reshape(-1, _ACC_ROWS, _LANES)
    max_ref[...] = jnp.maximum(max_ref[...], jnp.max(a, axis=0))
    cnt_ref[...] = cnt_ref[...] + jnp.sum(ones, axis=0)


def _berhu_sum_kernel(s_ref, p_ref, t_ref, sum_ref, *,
                      block_rows, total_rows, mask_tail):
    """Running sum of the berhu-transformed |t - p| into an (8,128) accumulator."""
    @pl.when(pl.program_id(0) == 0)
    def _():
        sum_ref[...] = jnp.zeros_like(sum_ref)
    c = s_ref[0, 0]
    c2 = s_ref[0, 1]
    inv_2c = s_ref[0, 2]
    mat = jnp.abs(t_ref[...].astype(jnp.float32) - p_ref[...].astype(jnp.float32))
    if mask_tail:
        mat = jnp.where(_tail_valid(block_rows, total_rows), mat, 0.0)
    quad = (mat * mat + c2) * inv_2c
    # strict > and < (mat == c contributes exactly 0, matching the PyTorch code)
    res = jnp.where(mat > c, quad, jnp.where(mat < c, mat, 0.0))
    res = res.reshape(-1, _ACC_ROWS, _LANES)
    sum_ref[...] = sum_ref[...] + jnp.sum(res, axis=0)


def _berhu_sum_mask_kernel(s_ref, m_ref, p_ref, t_ref, sum_ref, *,
                           block_rows, total_rows, mask_tail):
    @pl.when(pl.program_id(0) == 0)
    def _():
        sum_ref[...] = jnp.zeros_like(sum_ref)
    c = s_ref[0, 0]
    c2 = s_ref[0, 1]
    inv_2c = s_ref[0, 2]
    sel = m_ref[...] != 0
    if mask_tail:
        sel = jnp.logical_and(sel, _tail_valid(block_rows, total_rows))
    mat = jnp.abs(t_ref[...].astype(jnp.float32) - p_ref[...].astype(jnp.float32))
    mat = jnp.where(sel, mat, 0.0)                # excluded elements contribute 0
    quad = (mat * mat + c2) * inv_2c
    res = jnp.where(mat > c, quad, jnp.where(mat < c, mat, 0.0))
    res = res.reshape(-1, _ACC_ROWS, _LANES)
    sum_ref[...] = sum_ref[...] + jnp.sum(res, axis=0)


# ---------------- JAX glue ----------------

def _interp_matrix(in_size, out_size):
    """(out_size, in_size) bilinear weight matrix (align_corners=True)."""
    if out_size > 1:
        pos = jnp.arange(out_size, dtype=jnp.float32) * ((in_size - 1) / (out_size - 1))
    else:
        pos = jnp.zeros((out_size,), jnp.float32)
    i0 = jnp.clip(jnp.floor(pos).astype(jnp.int32), 0, in_size - 1)
    i1 = jnp.minimum(i0 + 1, in_size - 1)
    w = pos - i0.astype(jnp.float32)
    return ((1.0 - w)[:, None] * jax.nn.one_hot(i0, in_size, dtype=jnp.float32)
            + w[:, None] * jax.nn.one_hot(i1, in_size, dtype=jnp.float32))


def _bilinear_align_corners(x, out_hw):
    """NCHW bilinear resize matching F.interpolate(mode='bilinear', align_corners=True).

    Implemented as two dense interpolation matmuls (Wy @ x @ Wx^T) so the
    resize runs on the otherwise-idle MXU instead of slow TPU gathers.
    """
    H, W = x.shape[-2:]
    Ho, Wo = out_hw
    if (H, W) == (Ho, Wo):
        return x
    wy = _interp_matrix(H, Ho)                     # (Ho, H)
    wx = _interp_matrix(W, Wo)                     # (Wo, W)
    xf = x.astype(jnp.float32)
    y = jnp.einsum('oh,nchw->ncow', wy, xf)
    return jnp.einsum('ncow,vw->ncov', y, wx)


def _to_rows(x, rows):
    """Flatten to (rows, 128); pad only the minimal (<1024-element) tail if needed."""
    flat = x.reshape(-1)
    total = rows * _LANES
    if total != flat.shape[0]:
        flat = jnp.pad(flat, (0, total - flat.shape[0]))
    return flat.reshape(rows, _LANES)


def berhu_loss(pred, target, mask=None, interpolate=True):
    if interpolate:
        pred = _bilinear_align_corners(pred, target.shape[-2:])

    n = target.size
    rows = max(_ACC_ROWS, _round_up(-(-n // _LANES), _ACC_ROWS))
    block_rows = min(_MAX_BLOCK_ROWS, rows)
    n_blocks = -(-rows // block_rows)
    mask_tail = (rows % block_rows) != 0          # ragged last block -> mask in-kernel

    p2 = _to_rows(pred, rows)
    t2 = _to_rows(target, rows)

    def tile_spec():
        if n_blocks >= 3:
            # Deeper input pipelining for the pure-streaming (DMA-bound) passes.
            return pl.BlockSpec((block_rows, _LANES), lambda i: (i, 0),
                                pipeline_mode=pl.Buffered(3))
        return pl.BlockSpec((block_rows, _LANES), lambda i: (i, 0))

    acc = pl.BlockSpec((_ACC_ROWS, _LANES), lambda i: (0, 0))
    smem = pl.BlockSpec(memory_space=pltpu.MemorySpace.SMEM)
    params = pltpu.CompilerParams(dimension_semantics=("arbitrary",))
    acc_shape = jax.ShapeDtypeStruct((_ACC_ROWS, _LANES), jnp.float32)
    statics = dict(block_rows=block_rows, total_rows=rows, mask_tail=mask_tail)

    # ---- Pass 1: c = 0.2 * max |target - pred| (+ selected count if masked) ----
    if mask is None:
        max_acc = pl.pallas_call(
            functools.partial(_max_kernel, **statics),
            out_shape=acc_shape,
            grid=(n_blocks,),
            in_specs=[tile_spec(), tile_spec()],
            out_specs=acc,
            compiler_params=params,
        )(p2, t2)
        count = jnp.float32(n)
        m2 = None
    else:
        m2 = _to_rows(mask.astype(jnp.int8), rows)   # 1 byte/elem mask stream
        max_acc, cnt_acc = pl.pallas_call(
            functools.partial(_max_count_kernel, **statics),
            out_shape=(acc_shape, acc_shape),
            grid=(n_blocks,),
            in_specs=[tile_spec(), tile_spec(), tile_spec()],
            out_specs=(acc, acc),
            compiler_params=params,
        )(m2, p2, t2)
        # NOTE: an all-false mask gives count == 0 -> NaN, matching the
        # PyTorch reference's failure mode.
        count = jnp.sum(cnt_acc)

    c = 0.2 * jnp.max(max_acc)
    # Clamp c away from 0 so 1/(2c) stays finite when pred == target.
    c_safe = jnp.maximum(c, jnp.float32(1e-30))
    # c, c^2, 1/(2c) precomputed once; the hot loop multiplies by the reciprocal.
    scal = jnp.stack([c_safe, c_safe * c_safe, 0.5 / c_safe]).astype(jnp.float32).reshape(1, 3)

    # ---- Pass 2: sum of berhu-transformed residuals ----
    if mask is None:
        sum_acc = pl.pallas_call(
            functools.partial(_berhu_sum_kernel, **statics),
            out_shape=acc_shape,
            grid=(n_blocks,),
            in_specs=[smem, tile_spec(), tile_spec()],
            out_specs=acc,
            compiler_params=params,
        )(scal, p2, t2)
    else:
        sum_acc = pl.pallas_call(
            functools.partial(_berhu_sum_mask_kernel, **statics),
            out_shape=acc_shape,
            grid=(n_blocks,),
            in_specs=[smem, tile_spec(), tile_spec(), tile_spec()],
            out_specs=acc,
            compiler_params=params,
        )(scal, m2, p2, t2)

    return jnp.sum(sum_acc) / count


# ---------------- pure-JAX reference (for verification) ----------------

def berhu_loss_ref(pred, target, mask=None, interpolate=True):
    pred = pred.astype(jnp.float32)
    target = target.astype(jnp.float32)
    if interpolate:
        pred = _bilinear_align_corners(pred, target.shape[-2:])
    if mask is not None:
        sel = mask.reshape(-1)
        pred = pred.reshape(-1)[sel]
        target = target.reshape(-1)[sel]
    mat = jnp.abs(target - pred)
    c = 0.2 * jnp.max(mat)
    quad = (mat * mat + c * c) / (2.0 * c)
    res = jnp.where(mat > c, quad, jnp.where(mat < c, mat, 0.0))
    return jnp.mean(res)


if __name__ == "__main__":
    key = jax.random.PRNGKey(0)
    k1, k2, k3, k4, k5 = jax.random.split(key, 5)

    # pred at a smaller spatial size so the bilinear (align_corners=True)
    # resize path of the forward is exercised.
    pred = jax.random.normal(k1, (2, 4, 8, 8), dtype=jnp.float32)
    target = jax.random.normal(k2, (2, 4, 16, 16), dtype=jnp.float32)

    # unmasked path
    out = jax.block_until_ready(berhu_loss(pred, target, mask=None, interpolate=True))
    ref = jax.block_until_ready(berhu_loss_ref(pred, target))
    assert jnp.allclose(out, ref, rtol=1e-5, atol=1e-6), (out, ref)

    # masked path (int8 mask fused into the kernels)
    mask = jax.random.bernoulli(k3, 0.7, target.shape)
    out_m = jax.block_until_ready(berhu_loss(pred, target, mask=mask, interpolate=True))
    ref_m = jax.block_until_ready(berhu_loss_ref(pred, target, mask=mask))
    assert jnp.allclose(out_m, ref_m, rtol=1e-5, atol=1e-6), (out_m, ref_m)

    # moderate shape: multi-block grid, ragged last block (in-kernel tail
    # masking), triple-buffered tiles, no wrapper pad (numel % 1024 == 0).
    pred_l = jax.random.normal(k4, (2, 4, 128, 130), dtype=jnp.float32)
    target_l = jax.random.normal(k5, (2, 4, 256, 260), dtype=jnp.float32)
    out_l = jax.block_until_ready(berhu_loss(pred_l, target_l, interpolate=True))
    ref_l = jax.block_until_ready(berhu_loss_ref(pred_l, target_l))
    assert jnp.allclose(out_l, ref_l, rtol=1e-4, atol=1e-5), (out_l, ref_l)

    print("KERNEL_OK")
</pallas_src>

<mosaic_0001>
module attributes {stable_mosaic.version = 11 : i64} {
  func.func @_max_kernel(%arg0: i32, %arg1: memref<16x128xf32, #tpu.memory_space<vmem>>, %arg2: memref<16x128xf32, #tpu.memory_space<vmem>>, %arg3: memref<8x128xf32, #tpu.memory_space<vmem>>) attributes {dimension_semantics = [#tpu.dimension_semantics<arbitrary>], iteration_bounds = array<i64: 1>, scalar_prefetch = 0 : i64, scratch_operands = 0 : i64, tpu.core_type = #tpu.core_type<tc>, window_params = [{transform_indices = @transform_0, window_bounds = array<i64: 16, 128>}, {transform_indices = @transform_1, window_bounds = array<i64: 16, 128>}, {pipeline_mode = #tpu.pipeline_mode<synchronous>, transform_indices = @transform_2, window_bounds = array<i64: 8, 128>}]} {
    %c0_i32 = arith.constant 0 : i32
    %0 = arith.cmpi eq, %arg0, %c0_i32 : i32
    %1 = arith.extui %0 : i1 to i32
    %c0_i32_0 = arith.constant 0 : i32
    %2 = arith.cmpi ne, %1, %c0_i32_0 : i32
    scf.if %2 {
      %cst_8 = arith.constant 0.000000e+00 : f32
      %12 = vector.broadcast %cst_8 : f32 to vector<8x128xf32>
      %c0_9 = arith.constant 0 : index
      %c0_10 = arith.constant 0 : index
      %13 = vector.load %arg3[%c0_9, %c0_10] : memref<8x128xf32, #tpu.memory_space<vmem>>, vector<8x128xf32>
      tpu.vector_store %arg3[%c0_9, %c0_10], %12 {strides = array<i32>} : memref<8x128xf32, #tpu.memory_space<vmem>>, vector<8x128xf32>,
    } else {
    }
    %c0 = arith.constant 0 : index
    %c0_1 = arith.constant 0 : index
    %3 = vector.load %arg2[%c0, %c0_1] : memref<16x128xf32, #tpu.memory_space<vmem>>, vector<16x128xf32>
    %c0_2 = arith.constant 0 : index
    %c0_3 = arith.constant 0 : index
    %4 = vector.load %arg1[%c0_2, %c0_3] : memref<16x128xf32, #tpu.memory_space<vmem>>, vector<16x128xf32>
    %5 = arith.subf %3, %4 : vector<16x128xf32>
    %6 = math.absf %5 : vector<16x128xf32>
    %7 = vector.shape_cast %6 : vector<16x128xf32> to vector<2x8x128xf32>
    %c0_4 = arith.constant 0 : index
    %c0_5 = arith.constant 0 : index
    %8 = vector.load %arg3[%c0_4, %c0_5] : memref<8x128xf32, #tpu.memory_space<vmem>>, vector<8x128xf32>
    %cst = arith.constant dense<0xFF800000> : vector<8x128xf32>
    %9 = vector.multi_reduction <maximumf>, %7, %cst [0] : vector<2x8x128xf32> to vector<8x128xf32>
    %10 = arith.maximumf %8, %9 : vector<8x128xf32>
    %c0_6 = arith.constant 0 : index
    %c0_7 = arith.constant 0 : index
    %11 = vector.load %arg3[%c0_6, %c0_7] : memref<8x128xf32, #tpu.memory_space<vmem>>, vector<8x128xf32>
    tpu.vector_store %arg3[%c0_6, %c0_7], %10 {strides = array<i32>} : memref<8x128xf32, #tpu.memory_space<vmem>>, vector<8x128xf32>,
    return
  }
  func.func @transform_0(%arg0: i32) -> (i32, i32) {
    %c0_i32 = arith.constant 0 : i32
    %c0_i32_0 = arith.constant 0 : i32
    return %arg0, %c0_i32 : i32, i32
  }
  func.func @transform_1(%arg0: i32) -> (i32, i32) {
    %c0_i32 = arith.constant 0 : i32
    %c0_i32_0 = arith.constant 0 : i32
    return %arg0, %c0_i32 : i32, i32
  }
  func.func @transform_2(%arg0: i32) -> (i32, i32) {
    %c0_i32 = arith.constant 0 : i32
    %c0_i32_0 = arith.constant 0 : i32
    %c0_i32_1 = arith.constant 0 : i32
    return %c0_i32, %c0_i32_0 : i32, i32
  }
}

</mosaic_0001>

<bundles_post_ra>
// kernel: tpu_custom_call.1
= control target key start
LH: loop header
LB: loop body
LE: loop exit
PB: predicated region body
PF: predicated region fallthrough
CT: control target
= control target key end

     0   :  { %7 = vsyncpa [#allocation3], 0  ;;  %s207_s0 = inlined_call_operand.hbm [shape: f32[16,128], index: 0, kind: input, shape index: {}]   ;;  %s208_s1 = inlined_call_operand.hbm [shape: f32[16,128], index: 1, kind: input, shape index: {}]   ;;  %s209_s2 = inlined_call_operand.hbm [shape: f32[8,128], index: 2, kind: output, shape index: {}]  }
   0x1   :  { %8 = vsyncpa [#allocation6], 0 }
   0x2   :  { %9 = vsyncpa [#allocation4], 0  ;;  %s151_s9 = smov [#allocation2]   ;;  %s79_s13 = scalar_lea.hbm %s207_s0, 256 }
   0x3   :  { %s15_s10 = sshll.u32 %s151_s9, 4  ;;  %p80_p0 = scmp.ne.s32.totalorder %s207_s0, %s79_s13  ;;  %s16_s10 = int_to_ptr.vmem [resolvable:$true] %s15_s10 }
   0x4   :  { %p83_p1 = scmp.lt.u32.totalorder %s79_s13, %s207_s0 }
   0x6   :  { %p85_p2 = pnand %p83_p1, %p80_p0 }
   0x8   :  { %88 = shalt.err (!%p85_p2)
}
   0x9   :  { %s89_s18 = scalar_lea.vmem %s16_s10, 256  ;;  %p94_p4 = scmp.lt.s32.totalorder %s16_s10, %s16_s10 }
   0xa   :  { %p90_p3 = scmp.ne.s32.totalorder %s16_s10, %s89_s18  ;;  %p95_p5 = scmp.lt.s32.totalorder %s89_s18, %s89_s18 }
   0xc   :  { %p96_p6 = por %p95_p5, %p94_p4 }
   0xe   :  { %p97_p7 = pnand %p96_p6, %p90_p3 }
  0x10   :  { %100 = shalt.err (!%p97_p7)
}
  0x11   :  { %s152_s19 = smov 128   ;;  %s153_s20 = smov 8  }
  0x12   :  { %21 = dma.hbm_to_vmem [thread:$0]  %s207_s0, 256, %s16_s10, [#allocation3], %s152_s19, %s152_s19, %s153_s20  }
  0x13   :  { %s154_s23 = smov [#allocation5]   ;;  %s101_s27 = scalar_lea.hbm %s208_s1, 256 }
  0x14   :  { %s27_s24 = sshll.u32 %s154_s23, 4  ;;  %p102_p8 = scmp.ne.s32.totalorder %s208_s1, %s101_s27  ;;  %s28_s24 = int_to_ptr.vmem [resolvable:$true] %s27_s24 }
  0x15   :  { %p105_p9 = scmp.lt.u32.totalorder %s101_s27, %s208_s1 }
  0x17   :  { %p107_p10 = pnand %p105_p9, %p102_p8 }
  0x19   :  { %110 = shalt.err (!%p107_p10)
}
  0x1a   :  { %s111_s4 = scalar_lea.vmem %s28_s24, 256  ;;  %p116_p12 = scmp.lt.s32.totalorder %s28_s24, %s28_s24 }
  0x1b   :  { %p112_p11 = scmp.ne.s32.totalorder %s28_s24, %s111_s4  ;;  %p117_p13 = scmp.lt.s32.totalorder %s111_s4, %s111_s4 }
  0x1d   :  { %p118_p0 = por %p117_p13, %p116_p12 }
  0x1f   :  { %p119_p1 = pnand %p118_p0, %p112_p11 }
  0x21   :  { %122 = shalt.err (!%p119_p1)
}
  0x22   :  { %33 = dma.hbm_to_vmem [thread:$0]  %s208_s1, 256, %s28_s24, [#allocation6], %s152_s19, %s152_s19, %s153_s20  }
  0x23   :  { %145 = dma.done.wait [#allocation3], 256  }
  0x24   :  { %146 = vsyncadd [#allocation3], 4294967040 }
  0x25   :  { %147 = dma.done.wait [#allocation6], 256  }
  0x26   :  { %148 = vsyncadd [#allocation6], 4294967040  ;;  %v45_v0 = vld [vmem:[#allocation5] sm:$0xff]  ;;  %v46_v1 = vld [vmem:[#allocation5 + $0x8] sm:$0xff]  ;;  %s155_s6 = smov [#allocation7]  }
  0x27   :  { %v47_v2 = vld [vmem:[#allocation2] sm:$0xff]  ;;  %v48_v3 = vld [vmem:[#allocation2 + $0x8] sm:$0xff]  ;;  %s63_s7 = sshll.u32 %s155_s6, 4  ;;  %s64_s7 = int_to_ptr.vmem [resolvable:$true] %s63_s7 }
  0x28   :  { %v49_v4 = vsub.f32 %v45_v0, %v47_v2  ;;  %v50_v5 = vsub.f32 %v46_v1, %v48_v3  ;;  %s123_s8 = scalar_lea.vmem %s64_s7, 128  ;;  %p128_p3 = scmp.lt.s32.totalorder %s64_s7, %s64_s7 }
  0x29   :  { %p124_p2 = scmp.ne.s32.totalorder %s64_s7, %s123_s8  ;;  %p129_p4 = scmp.lt.s32.totalorder %s123_s8, %s123_s8 }
  0x2a   :  { %v51_v6 = vand.u32 2147483647, %v49_v4  ;;  %v52_v7 = vand.u32 2147483647, %v50_v5 }
  0x2b   :  { %p130_p5 = por %p129_p4, %p128_p3 }
  0x2c   :  { %v54_v8 = vmax.f32.f32 %v51_v6, %v52_v7 }
  0x2d   :  { %p131_p6 = pnand %p130_p5, %p124_p2 }
  0x2e   :  { %v55_v9 = vmax.f32 %v54_v8, 0.0 }
  0x30   :  { %56 = vst [vmem:[#allocation7] sm:$0xff] %v55_v9 }
  0x31   :  { %134 = shalt.err (!%p131_p6)
}
  0x32   :  { %s135_s10 = scalar_lea.hbm %s209_s2, 128 }
  0x33   :  { %p136_p7 = scmp.ne.s32.totalorder %s209_s2, %s135_s10  ;;  %p139_p8 = scmp.lt.u32.totalorder %s135_s10, %s209_s2 }
  0x35   :  { %p141_p9 = pnand %p139_p8, %p136_p7 }
  0x37   :  { %144 = shalt.err (!%p141_p9)
}
  0x38   :  { %66 = dma.vmem_to_hbm [thread:$0]  %s64_s7, 128, %s209_s2, [#allocation4]  }
  0x39   :  { %149 = dma.done.wait [#allocation4], 128  }
  0x3a   :  { %150 = vsyncadd [#allocation4], 4294967168 }
  0x3b   :  { %70 = vsyncpa [#allocation3], 1 }
  0x3c   :  { %71 = vsyncpa [#allocation6], 1 }
  0x3d   :  { %72 = vsyncpa [#allocation4], 1 }

</bundles_post_ra>
